<compile_context>
chip_gen: v6e
topology: v6e:2x2x1
jax: 0.10.0
libtpu: 0.0.40
codegen_flags: <defaults>
</compile_context>

<pallas_src>
import jax
import jax.numpy as jnp
from jax.experimental import pallas as pl
from jax.experimental.pallas import tpu as pltpu


NEG_SLOPE = 0.01  # torch nn.LeakyReLU default


def _round_up(x, m):
    return ((x + m - 1) // m) * m


def _pad2(a, rows, cols):
    r, c = a.shape
    return jnp.pad(a, ((0, rows - r), (0, cols - c)))


# ------------------------------ Pallas kernel -------------------------------

def _make_head_kernel(depth, use_proj, h_p, c_p):
    """Fused task-head kernel: `depth` residual blocks + final linear.
    One grid step per (head, batch-tile); weights BN-folded, bf16, lane-padded."""

    def kernel(*refs):
        i = 0
        z_ref = refs[i]; i += 1
        w0_ref = refs[i]; i += 1
        if use_proj:
            wp_ref = refs[i]; i += 1
        if depth > 1:
            wd_ref = refs[i]; i += 1
        wf_ref = refs[i]; i += 1
        b_ref = refs[i]; i += 1
        o_ref = refs[i]

        x = z_ref[...]                                  # f32 (bt, din_p)
        xb = x.astype(jnp.bfloat16)                     # cast only at MXU inputs

        # --- block 0: LeakyReLU(BN(fc(x))) + residual ------------------------
        row = 0
        h = jnp.dot(xb, w0_ref[...], preferred_element_type=jnp.float32)
        h = h + b_ref[row:row + 1, :h_p]
        row += 1
        h = jnp.maximum(h, NEG_SLOPE * h)               # f32 VPU

        if use_proj:
            res = jnp.dot(xb, wp_ref[...], preferred_element_type=jnp.float32)
            res = res + b_ref[row:row + 1, :h_p]
            row += 1
        else:
            res = x                                     # din_p == h_p (zero-padded)
        a = h + res                                     # (bt, h_p) f32

        # --- blocks 1..depth-1 (in_dim == out_dim -> no projection) ----------
        if depth > 1:
            for d in range(depth - 1):                  # static unroll
                hd = jnp.dot(a.astype(jnp.bfloat16), wd_ref[d],
                             preferred_element_type=jnp.float32)
                hd = hd + b_ref[row:row + 1, :h_p]
                row += 1
                hd = jnp.maximum(hd, NEG_SLOPE * hd)
                a = hd + a

        # --- final linear (lane-padded logits) --------------------------------
        out = jnp.dot(a.astype(jnp.bfloat16), wf_ref[...],
                      preferred_element_type=jnp.float32)
        o_ref[...] = out + b_ref[row:row + 1, :c_p]

    return kernel


# --------------------------- parameter creation -----------------------------

def _init_linear(key, in_dim, out_dim):
    kw, kb = jax.random.split(key)
    lim = 1.0 / jnp.sqrt(jnp.float32(in_dim))
    w = jax.random.uniform(kw, (in_dim, out_dim), jnp.float32, -lim, lim)
    b = jax.random.uniform(kb, (1, out_dim), jnp.float32, -lim, lim)
    return w, b


def _init_resblock(key, in_dim, out_dim, use_batch_norm=True, eps=1e-5):
    kfc, kproj, kbn = jax.random.split(key, 3)
    p = {"use_projection": in_dim != out_dim}
    p["fc_w"], p["fc_b"] = _init_linear(kfc, in_dim, out_dim)
    if p["use_projection"]:
        p["proj_w"], p["proj_b"] = _init_linear(kproj, in_dim, out_dim)
    # Eval-mode BatchNorm1d: scale = gamma/sqrt(var+eps), shift = beta - mean*scale.
    if use_batch_norm:
        k1, k2, k3, k4 = jax.random.split(kbn, 4)
        gamma = jax.random.uniform(k1, (1, out_dim), jnp.float32, 0.5, 1.5)
        beta = 0.1 * jax.random.normal(k2, (1, out_dim), jnp.float32)
        r_mean = 0.1 * jax.random.normal(k3, (1, out_dim), jnp.float32)
        r_var = jax.random.uniform(k4, (1, out_dim), jnp.float32, 0.5, 1.5)
        scale = gamma / jnp.sqrt(r_var + eps)
        shift = beta - r_mean * scale
    else:
        scale = jnp.ones((1, out_dim), jnp.float32)
        shift = jnp.zeros((1, out_dim), jnp.float32)
    p["bn_scale"] = scale
    p["bn_shift"] = shift
    return p


def init_multitask_predictor(key, task_classes, latent_dim, hidden_dim,
                             predictor_depth=3, task_strategy="parallel",
                             use_batch_norm=True):
    heads = []
    input_dim = latent_dim
    for task_index, num_classes in enumerate(task_classes):
        if task_strategy == "sequential" and task_index > 0:
            input_dim += task_classes[task_index - 1]
        key, khead = jax.random.split(key)
        blocks = []
        in_d = input_dim
        for _ in range(predictor_depth):
            khead, kb = jax.random.split(khead)
            blocks.append(_init_resblock(kb, in_d, hidden_dim, use_batch_norm))
            in_d = hidden_dim
        khead, kf = jax.random.split(khead)
        final_w, final_b = _init_linear(kf, hidden_dim, num_classes)
        heads.append({"blocks": blocks, "final_w": final_w, "final_b": final_b,
                      "num_classes": num_classes})
    return heads


# ------------------- packing: BN fold + bf16 + padding + stack ---------------
# Runs ONCE at build time (hoisted out of the forward path).

def pack_heads(heads, weight_dtype=jnp.bfloat16):
    blk0 = heads[0]["blocks"][0]
    in_dim, hidden = blk0["fc_w"].shape
    depth = len(heads[0]["blocks"])
    use_proj = blk0["use_projection"]
    for h in heads:  # packed heads must share structure
        assert h["blocks"][0]["fc_w"].shape == (in_dim, hidden)
        assert len(h["blocks"]) == depth
        assert h["blocks"][0]["use_projection"] == use_proj

    h_p = _round_up(hidden, 128)
    c_p = _round_up(max(h["num_classes"] for h in heads), 128)
    # K of block 0: true width (16-aligned for bf16 sublane packing), NOT 128-padded.
    # If no projection, in_dim == hidden and the residual needs width h_p.
    din_p = _round_up(in_dim, 16) if use_proj else h_p
    bw = max(h_p, c_p)
    n_bias = 1 + (1 if use_proj else 0) + (depth - 1) + 1
    r_p = _round_up(n_bias, 8)

    w0s, wps, wds, wfs, biases = [], [], [], [], []
    for head in heads:
        b0 = head["blocks"][0]
        s, t = b0["bn_scale"], b0["bn_shift"]
        w0s.append(_pad2(b0["fc_w"] * s, din_p, h_p).astype(weight_dtype))   # BN fold
        brows = [_pad2(b0["fc_b"] * s + t, 1, bw)]
        if use_proj:
            wps.append(_pad2(b0["proj_w"], din_p, h_p).astype(weight_dtype))
            brows.append(_pad2(b0["proj_b"], 1, bw))
        if depth > 1:
            ws = []
            for blk in head["blocks"][1:]:
                s, t = blk["bn_scale"], blk["bn_shift"]
                ws.append(_pad2(blk["fc_w"] * s, h_p, h_p).astype(weight_dtype))
                brows.append(_pad2(blk["fc_b"] * s + t, 1, bw))
            wds.append(jnp.stack(ws))
        wfs.append(_pad2(head["final_w"], h_p, c_p).astype(weight_dtype))
        brows.append(_pad2(head["final_b"], 1, bw))
        bias = jnp.concatenate(brows, axis=0).astype(jnp.float32)
        biases.append(_pad2(bias, r_p, bw))            # one bias slab per head

    arrays = {"w0": jnp.stack(w0s), "wf": jnp.stack(wfs), "bias": jnp.stack(biases)}
    if use_proj:
        arrays["wp"] = jnp.stack(wps)
    if depth > 1:
        arrays["wd"] = jnp.stack(wds)
    meta = dict(depth=depth, use_proj=use_proj, in_dim=in_dim,
                din_p=din_p, h_p=h_p, c_p=c_p, bw=bw, r_p=r_p)
    return arrays, meta


# ------------------------------- fused forward -------------------------------

def fused_heads_forward(z, arrays, meta):
    """One pallas_call for all packed heads. Returns (num_heads, B, C_pad) f32."""
    B, dz = z.shape
    din_p, h_p, c_p = meta["din_p"], meta["h_p"], meta["c_p"]
    bw, r_p = meta["bw"], meta["r_p"]
    depth, use_proj = meta["depth"], meta["use_proj"]
    nh = arrays["w0"].shape[0]

    # Batch tiling: one tile for small batches; 256-row tiles (full MXU M on
    # v6e/v7x) otherwise. Weights' index_map is constant along the batch axis,
    # so they stay resident while batch tiles stream.
    bt = _round_up(B, 8) if B <= 256 else 256
    b_p = _round_up(B, bt)
    nb = b_p // bt

    z_pad = jnp.pad(z.astype(jnp.float32), ((0, b_p - B), (0, din_p - dz)))

    args = [z_pad, arrays["w0"]]
    in_specs = [
        pl.BlockSpec((bt, din_p), lambda h, b: (b, 0)),                 # shared input
        pl.BlockSpec((None, din_p, h_p), lambda h, b: (h, 0, 0)),
    ]
    if use_proj:
        args.append(arrays["wp"])
        in_specs.append(pl.BlockSpec((None, din_p, h_p), lambda h, b: (h, 0, 0)))
    if depth > 1:
        args.append(arrays["wd"])
        in_specs.append(
            pl.BlockSpec((None, depth - 1, h_p, h_p), lambda h, b: (h, 0, 0, 0)))
        # TODO(synk): for very large hidden*depth (h_p>=1024, depth>=8) depth-tile
        # this block (extra 'arbitrary' grid axis + VMEM activation carry) to fit
        # v7x's 64 MiB VMEM; at the sizes used here it is tiny.
    args += [arrays["wf"], arrays["bias"]]
    in_specs += [
        pl.BlockSpec((None, h_p, c_p), lambda h, b: (h, 0, 0)),
        pl.BlockSpec((None, r_p, bw), lambda h, b: (h, 0, 0)),          # all biases, 1 DMA
    ]

    # Scoped VMEM sized to the double-buffered operand set (+ headroom).
    wbytes = jnp.dtype(arrays["w0"].dtype).itemsize
    per_step = (bt * din_p * 4
                + din_p * h_p * wbytes * (2 if use_proj else 1)
                + (depth - 1) * h_p * h_p * wbytes
                + h_p * c_p * wbytes
                + r_p * bw * 4
                + bt * c_p * 4)
    vmem_bytes = int(min(max(2 * per_step + (4 << 20), 16 << 20), 64 << 20))

    out = pl.pallas_call(
        _make_head_kernel(depth, use_proj, h_p, c_p),
        out_shape=jax.ShapeDtypeStruct((nh, b_p, c_p), jnp.float32),
        grid=(nh, nb),
        in_specs=in_specs,
        out_specs=pl.BlockSpec((None, bt, c_p), lambda h, b: (h, b, 0)),
        compiler_params=pltpu.CompilerParams(
            dimension_semantics=("parallel", "parallel"),
            vmem_limit_bytes=vmem_bytes),
    )(*args)
    return out[:, :B, :]                                                # drop batch pad


def build_forward(heads, task_classes, task_strategy="parallel"):
    """Pack weights ONCE (BN fold + padding + bf16) and return a forward fn."""
    if task_strategy == "parallel":
        arrays, meta = pack_heads(heads)

        @jax.jit
        def _fwd(z, arrays):
            out = fused_heads_forward(z, arrays, meta)
            return tuple(out[i, :, :nc] for i, nc in enumerate(task_classes))

        return lambda z: list(_fwd(z, arrays))

    elif task_strategy == "sequential":
        packs = [pack_heads([h]) for h in heads]   # packed once, reused per call

        def fwd(z):
            outs, cur = [], z
            for (arrays, meta), nc in zip(packs, task_classes):
                logits = fused_heads_forward(cur, arrays, meta)[0, :, :nc]
                outs.append(logits)
                cur = jnp.concatenate([cur, jax.nn.softmax(logits, axis=1)], axis=1)
            return outs

        return fwd

    raise ValueError(f"Unknown task_strategy: {task_strategy}")


# ---------------------------- pure-JAX references ----------------------------

def _ref_dot(a, w, bf16_dots):
    if bf16_dots:
        return jnp.dot(a.astype(jnp.bfloat16), w.astype(jnp.bfloat16),
                       preferred_element_type=jnp.float32)
    return jnp.dot(a, w, precision=jax.lax.Precision.HIGHEST)


def _ref_block(x, p, bf16_dots):
    w_fc = p["fc_w"] * p["bn_scale"]          # eval-mode BN folded (as in packing)
    b_fc = p["fc_b"] * p["bn_scale"] + p["bn_shift"]
    h = _ref_dot(x, w_fc, bf16_dots) + b_fc
    h = jnp.where(h > 0, h, NEG_SLOPE * h)
    if p["use_projection"]:
        res = _ref_dot(x, p["proj_w"], bf16_dots) + p["proj_b"]
    else:
        res = x
    return h + res


def _ref_head(x, head, bf16_dots):
    for blk in head["blocks"]:
        x = _ref_block(x, blk, bf16_dots)
    return _ref_dot(x, head["final_w"], bf16_dots) + head["final_b"]


def _ref_forward(z, heads, task_strategy="parallel", bf16_dots=False):
    if task_strategy == "parallel":
        return [_ref_head(z, h, bf16_dots) for h in heads]
    outputs, cur = [], z
    for head in heads:
        out = _ref_head(cur, head, bf16_dots)
        outputs.append(out)
        cur = jnp.concatenate([cur, jax.nn.softmax(out, axis=1)], axis=1)
    return outputs


# ---------------------------------- main -------------------------------------

if __name__ == "__main__":
    key = jax.random.PRNGKey(0)
    batch = 8
    latent_dim = 48          # != hidden_dim -> exercises the projection path
    hidden_dim = 32
    task_classes = [3, 2]
    predictor_depth = 3

    kparam, kparam_seq, kz = jax.random.split(key, 3)
    z = jax.random.normal(kz, (batch, latent_dim), jnp.float32)

    # ----------------------- parallel strategy (default) ----------------------
    heads = init_multitask_predictor(
        kparam, task_classes, latent_dim, hidden_dim,
        predictor_depth=predictor_depth, task_strategy="parallel",
        use_batch_norm=True)
    fwd = build_forward(heads, task_classes, "parallel")     # packs once
    outputs = [jax.block_until_ready(o) for o in fwd(z)]

    assert len(outputs) == len(task_classes)
    for o, nc in zip(outputs, task_classes):
        assert o.shape == (batch, nc), o.shape
        assert o.dtype == jnp.float32

    # strict check vs. a bf16-matched pure-JAX reference (validates BN fold,
    # zero-padding, bias packing, residual plumbing and the fused structure)
    refs_bf16 = _ref_forward(z, heads, "parallel", bf16_dots=True)
    for o, r in zip(outputs, refs_bf16):
        assert jnp.allclose(o, r, atol=2e-3, rtol=2e-3), float(jnp.max(jnp.abs(o - r)))

    # loose check vs. the full-f32 reference (bf16 weights are the only deviation)
    refs_f32 = _ref_forward(z, heads, "parallel", bf16_dots=False)
    for o, r in zip(outputs, refs_f32):
        assert jnp.allclose(o, r, atol=2e-1, rtol=2e-1), float(jnp.max(jnp.abs(o - r)))

    # --------------------------- sequential strategy --------------------------
    heads_seq = init_multitask_predictor(
        kparam_seq, task_classes, latent_dim, hidden_dim,
        predictor_depth=predictor_depth, task_strategy="sequential",
        use_batch_norm=True)
    fwd_seq = build_forward(heads_seq, task_classes, "sequential")
    outputs_seq = [jax.block_until_ready(o) for o in fwd_seq(z)]
    refs_seq = _ref_forward(z, heads_seq, "sequential", bf16_dots=True)
    for o, r, nc in zip(outputs_seq, refs_seq, task_classes):
        assert o.shape == (batch, nc), o.shape
        assert jnp.allclose(o, r, atol=2e-3, rtol=2e-3), float(jnp.max(jnp.abs(o - r)))

    print("KERNEL_OK")
</pallas_src>

<mosaic_0001>
module attributes {stable_mosaic.version = 11 : i64} {
  func.func @kernel(%arg0: i32, %arg1: i32, %arg2: memref<8x48xf32, #tpu.memory_space<vmem>>, %arg3: memref<1x48x128xbf16, #tpu.memory_space<vmem>>, %arg4: memref<1x48x128xbf16, #tpu.memory_space<vmem>>, %arg5: memref<1x2x128x128xbf16, #tpu.memory_space<vmem>>, %arg6: memref<1x128x128xbf16, #tpu.memory_space<vmem>>, %arg7: memref<1x8x128xf32, #tpu.memory_space<vmem>>, %arg8: memref<1x8x128xf32, #tpu.memory_space<vmem>>) attributes {dimension_semantics = [#tpu.dimension_semantics<parallel>, #tpu.dimension_semantics<parallel>], iteration_bounds = array<i64: 2, 1>, scalar_prefetch = 0 : i64, scratch_operands = 0 : i64, tpu.core_type = #tpu.core_type<tc>, window_params = [{transform_indices = @transform_0, window_bounds = array<i64: 8, 48>}, {transform_indices = @transform_1, window_bounds = array<i64: 1, 48, 128>}, {transform_indices = @transform_2, window_bounds = array<i64: 1, 48, 128>}, {transform_indices = @transform_3, window_bounds = array<i64: 1, 2, 128, 128>}, {transform_indices = @transform_4, window_bounds = array<i64: 1, 128, 128>}, {transform_indices = @transform_5, window_bounds = array<i64: 1, 8, 128>}, {transform_indices = @transform_6, window_bounds = array<i64: 1, 8, 128>}]} {
    %c0 = arith.constant 0 : index
    %c0_0 = arith.constant 0 : index
    %0 = vector.load %arg2[%c0, %c0_0] : memref<8x48xf32, #tpu.memory_space<vmem>>, vector<8x48xf32>
    %1 = arith.truncf %0 : vector<8x48xf32> to vector<8x48xbf16>
    %c0_1 = arith.constant 0 : index
    %c0_2 = arith.constant 0 : index
    %c0_3 = arith.constant 0 : index
    %2 = vector.load %arg3[%c0_1, %c0_2, %c0_3] : memref<1x48x128xbf16, #tpu.memory_space<vmem>>, vector<1x48x128xbf16>
    %3 = vector.shape_cast %2 : vector<1x48x128xbf16> to vector<48x128xbf16>
    %cst = arith.constant dense<0.000000e+00> : vector<8x128xf32>
    %4 = tpu.matmul %1, %3, %cst {dimension_numbers = #tpu.dot_dimension_numbers<[1], [0], [0], [1], [0, 0, 1, 1], [], []>} : vector<8x48xbf16>, vector<48x128xbf16>, vector<8x128xf32> -> vector<8x128xf32>
    %c0_4 = arith.constant 0 : index
    %c0_5 = arith.constant 0 : index
    %c0_6 = arith.constant 0 : index
    %5 = vector.load %arg7[%c0_4, %c0_5, %c0_6] : memref<1x8x128xf32, #tpu.memory_space<vmem>>, vector<1x1x128xf32>
    %6 = vector.shape_cast %5 : vector<1x1x128xf32> to vector<1x128xf32>
    %7 = vector.broadcast %6 : vector<1x128xf32> to vector<8x128xf32>
    %8 = arith.addf %4, %7 : vector<8x128xf32>
    %cst_7 = arith.constant 0.00999999977 : f32
    %9 = vector.broadcast %cst_7 : f32 to vector<8x128xf32>
    %10 = arith.mulf %9, %8 : vector<8x128xf32>
    %11 = arith.maximumf %8, %10 : vector<8x128xf32>
    %c0_8 = arith.constant 0 : index
    %c0_9 = arith.constant 0 : index
    %c0_10 = arith.constant 0 : index
    %12 = vector.load %arg4[%c0_8, %c0_9, %c0_10] : memref<1x48x128xbf16, #tpu.memory_space<vmem>>, vector<1x48x128xbf16>
    %13 = vector.shape_cast %12 : vector<1x48x128xbf16> to vector<48x128xbf16>
    %cst_11 = arith.constant dense<0.000000e+00> : vector<8x128xf32>
    %14 = tpu.matmul %1, %13, %cst_11 {dimension_numbers = #tpu.dot_dimension_numbers<[1], [0], [0], [1], [0, 0, 1, 1], [], []>} : vector<8x48xbf16>, vector<48x128xbf16>, vector<8x128xf32> -> vector<8x128xf32>
    %c0_12 = arith.constant 0 : index
    %c1 = arith.constant 1 : index
    %c0_13 = arith.constant 0 : index
    %15 = vector.load %arg7[%c0_12, %c1, %c0_13] : memref<1x8x128xf32, #tpu.memory_space<vmem>>, vector<1x1x128xf32>
    %16 = vector.shape_cast %15 : vector<1x1x128xf32> to vector<1x128xf32>
    %17 = vector.broadcast %16 : vector<1x128xf32> to vector<8x128xf32>
    %18 = arith.addf %14, %17 : vector<8x128xf32>
    %19 = arith.addf %11, %18 : vector<8x128xf32>
    %20 = arith.truncf %19 : vector<8x128xf32> to vector<8x128xbf16>
    %c0_14 = arith.constant 0 : index
    %c0_15 = arith.constant 0 : index
    %c0_16 = arith.constant 0 : index
    %c0_17 = arith.constant 0 : index
    %21 = vector.load %arg5[%c0_14, %c0_15, %c0_16, %c0_17] : memref<1x2x128x128xbf16, #tpu.memory_space<vmem>>, vector<1x1x128x128xbf16>
    %22 = vector.shape_cast %21 : vector<1x1x128x128xbf16> to vector<128x128xbf16>
    %cst_18 = arith.constant dense<0.000000e+00> : vector<8x128xf32>
    %23 = tpu.matmul %20, %22, %cst_18 {dimension_numbers = #tpu.dot_dimension_numbers<[1], [0], [0], [1], [0, 0, 1, 1], [], []>} : vector<8x128xbf16>, vector<128x128xbf16>, vector<8x128xf32> -> vector<8x128xf32>
    %c0_19 = arith.constant 0 : index
    %c2 = arith.constant 2 : index
    %c0_20 = arith.constant 0 : index
    %24 = vector.load %arg7[%c0_19, %c2, %c0_20] : memref<1x8x128xf32, #tpu.memory_space<vmem>>, vector<1x1x128xf32>
    %25 = vector.shape_cast %24 : vector<1x1x128xf32> to vector<1x128xf32>
    %26 = vector.broadcast %25 : vector<1x128xf32> to vector<8x128xf32>
    %27 = arith.addf %23, %26 : vector<8x128xf32>
    %cst_21 = arith.constant 0.00999999977 : f32
    %28 = vector.broadcast %cst_21 : f32 to vector<8x128xf32>
    %29 = arith.mulf %28, %27 : vector<8x128xf32>
    %30 = arith.maximumf %27, %29 : vector<8x128xf32>
    %31 = arith.addf %30, %19 : vector<8x128xf32>
    %32 = arith.truncf %31 : vector<8x128xf32> to vector<8x128xbf16>
    %c0_22 = arith.constant 0 : index
    %c1_23 = arith.constant 1 : index
    %c0_24 = arith.constant 0 : index
    %c0_25 = arith.constant 0 : index
    %33 = vector.load %arg5[%c0_22, %c1_23, %c0_24, %c0_25] : memref<1x2x128x128xbf16, #tpu.memory_space<vmem>>, vector<1x1x128x128xbf16>
    %34 = vector.shape_cast %33 : vector<1x1x128x128xbf16> to vector<128x128xbf16>
    %cst_26 = arith.constant dense<0.000000e+00> : vector<8x128xf32>
    %35 = tpu.matmul %32, %34, %cst_26 {dimension_numbers = #tpu.dot_dimension_numbers<[1], [0], [0], [1], [0, 0, 1, 1], [], []>} : vector<8x128xbf16>, vector<128x128xbf16>, vector<8x128xf32> -> vector<8x128xf32>
    %c0_27 = arith.constant 0 : index
    %c3 = arith.constant 3 : index
    %c0_28 = arith.constant 0 : index
    %36 = vector.load %arg7[%c0_27, %c3, %c0_28] : memref<1x8x128xf32, #tpu.memory_space<vmem>>, vector<1x1x128xf32>
    %37 = vector.shape_cast %36 : vector<1x1x128xf32> to vector<1x128xf32>
    %38 = vector.broadcast %37 : vector<1x128xf32> to vector<8x128xf32>
    %39 = arith.addf %35, %38 : vector<8x128xf32>
    %cst_29 = arith.constant 0.00999999977 : f32
    %40 = vector.broadcast %cst_29 : f32 to vector<8x128xf32>
    %41 = arith.mulf %40, %39 : vector<8x128xf32>
    %42 = arith.maximumf %39, %41 : vector<8x128xf32>
    %43 = arith.addf %42, %31 : vector<8x128xf32>
    %44 = arith.truncf %43 : vector<8x128xf32> to vector<8x128xbf16>
    %c0_30 = arith.constant 0 : index
    %c0_31 = arith.constant 0 : index
    %c0_32 = arith.constant 0 : index
    %45 = vector.load %arg6[%c0_30, %c0_31, %c0_32] : memref<1x128x128xbf16, #tpu.memory_space<vmem>>, vector<1x128x128xbf16>
    %46 = vector.shape_cast %45 : vector<1x128x128xbf16> to vector<128x128xbf16>
    %cst_33 = arith.constant dense<0.000000e+00> : vector<8x128xf32>
    %47 = tpu.matmul %44, %46, %cst_33 {dimension_numbers = #tpu.dot_dimension_numbers<[1], [0], [0], [1], [0, 0, 1, 1], [], []>} : vector<8x128xbf16>, vector<128x128xbf16>, vector<8x128xf32> -> vector<8x128xf32>
    %c0_34 = arith.constant 0 : index
    %c4 = arith.constant 4 : index
    %c0_35 = arith.constant 0 : index
    %48 = vector.load %arg7[%c0_34, %c4, %c0_35] : memref<1x8x128xf32, #tpu.memory_space<vmem>>, vector<1x1x128xf32>
    %49 = vector.shape_cast %48 : vector<1x1x128xf32> to vector<1x128xf32>
    %50 = vector.broadcast %49 : vector<1x128xf32> to vector<8x128xf32>
    %51 = arith.addf %47, %50 : vector<8x128xf32>
    %c0_36 = arith.constant 0 : index
    %c0_37 = arith.constant 0 : index
    %c0_38 = arith.constant 0 : index
    %52 = vector.load %arg8[%c0_36, %c0_37, %c0_38] : memref<1x8x128xf32, #tpu.memory_space<vmem>>, vector<1x8x128xf32>
    %53 = vector.shape_cast %52 : vector<1x8x128xf32> to vector<8x128xf32>
    %54 = vector.shape_cast %51 : vector<8x128xf32> to vector<1x8x128xf32>
    tpu.vector_store %arg8[%c0_36, %c0_37, %c0_38], %54 {strides = array<i32>} : memref<1x8x128xf32, #tpu.memory_space<vmem>>, vector<1x8x128xf32>,
    return
  }
  func.func @transform_0(%arg0: i32, %arg1: i32) -> (i32, i32) {
    %c0_i32 = arith.constant 0 : i32
    %c0_i32_0 = arith.constant 0 : i32
    return %arg1, %c0_i32 : i32, i32
  }
  func.func @transform_1(%arg0: i32, %arg1: i32) -> (i32, i32, i32) {
    %c0_i32 = arith.constant 0 : i32
    %c0_i32_0 = arith.constant 0 : i32
    %c0_i32_1 = arith.constant 0 : i32
    return %arg0, %c0_i32, %c0_i32_0 : i32, i32, i32
  }
  func.func @transform_2(%arg0: i32, %arg1: i32) -> (i32, i32, i32) {
    %c0_i32 = arith.constant 0 : i32
    %c0_i32_0 = arith.constant 0 : i32
    %c0_i32_1 = arith.constant 0 : i32
    return %arg0, %c0_i32, %c0_i32_0 : i32, i32, i32
  }
  func.func @transform_3(%arg0: i32, %arg1: i32) -> (i32, i32, i32, i32) {
    %c0_i32 = arith.constant 0 : i32
    %c0_i32_0 = arith.constant 0 : i32
    %c0_i32_1 = arith.constant 0 : i32
    %c0_i32_2 = arith.constant 0 : i32
    return %arg0, %c0_i32, %c0_i32_0, %c0_i32_1 : i32, i32, i32, i32
  }
  func.func @transform_4(%arg0: i32, %arg1: i32) -> (i32, i32, i32) {
    %c0_i32 = arith.constant 0 : i32
    %c0_i32_0 = arith.constant 0 : i32
    %c0_i32_1 = arith.constant 0 : i32
    return %arg0, %c0_i32, %c0_i32_0 : i32, i32, i32
  }
  func.func @transform_5(%arg0: i32, %arg1: i32) -> (i32, i32, i32) {
    %c0_i32 = arith.constant 0 : i32
    %c0_i32_0 = arith.constant 0 : i32
    %c0_i32_1 = arith.constant 0 : i32
    return %arg0, %c0_i32, %c0_i32_0 : i32, i32, i32
  }
  func.func @transform_6(%arg0: i32, %arg1: i32) -> (i32, i32, i32) {
    %c0_i32 = arith.constant 0 : i32
    %c0_i32_0 = arith.constant 0 : i32
    return %arg0, %arg1, %c0_i32 : i32, i32, i32
  }
}

</mosaic_0001>

<bundles_post_ra>
// kernel: _fwd.1
= control target key start
LH: loop header
LB: loop body
LE: loop exit
PB: predicated region body
PF: predicated region fallthrough
CT: control target
= control target key end

     0   :  { %s2025_s0 = inlined_call_operand.hbm [shape: f32[8,48], index: 0, kind: input, shape index: {}]   ;;  %s2026_s1 = inlined_call_operand.hbm [shape: bf16[2,48,128], index: 1, kind: input, shape index: {}]   ;;  %s2027_s2 = inlined_call_operand.hbm [shape: bf16[2,48,128], index: 2, kind: input, shape index: {}]   ;;  %s2028_s3 = inlined_call_operand.hbm [shape: bf16[2,2,128,128], index: 3, kind: input, shape index: {}]   ;;  %s2029_s4 = inlined_call_operand.hbm [shape: bf16[2,128,128], index: 4, kind: input, shape index: {}]   ;;  %s2030_s5 = inlined_call_operand.hbm [shape: f32[2,8,128], index: 5, kind: input, shape index: {}]   ;;  %s2031_s6 = inlined_call_operand.vmem [shape: f32[2,8,128], index: 6, kind: output, shape index: {}]  }
   0x1   :  { %2042 = sst [smem:[#allocation19_spill]] %s2025_s0 }
   0x2   :  { %2043 = sst [smem:[#allocation20_spill]] %s2026_s1 }
   0x3   :  { %2044 = sst [smem:[#allocation21_spill]] %s2027_s2 }
   0x4   :  { %11 = vsyncpa [#allocation3], 0 }
   0x5   :  { %12 = vsyncpa [#allocation5], 0 }
   0x6   :  { %14 = vsyncpa [#allocation5 + $0x1], 0 }
   0x7   :  { %15 = vsyncpa [#allocation8], 0 }
   0x8   :  { %17 = vsyncpa [#allocation8 + $0x1], 0 }
   0x9   :  { %18 = vsyncpa [#allocation11], 0 }
   0xa   :  { %20 = vsyncpa [#allocation11 + $0x1], 0  ;;  %s1723_s21 = smov 0   ;;  %s1725_s22 = smov 0  }
   0xb   :  { %s1727_s23 = smov 0   ;;  %s1729_s24 = smov 0  }
   0xc   :  { %s1731_s25 = smov 0   ;;  %s1733_s26 = smov 0  }
   0xd LB: > { %2045 = sst [smem:[#allocation16_spill]] %s1664_s23  ;;  %s38_s27 = sadd.s32 1, %s1672_s25  ;;  %s1676_s26 = sphi %s1733_s26, %s26_s26   ;;  %s1672_s25 = sphi %s1731_s25, %s2069_s25   ;;  %s1668_s24 = sphi %s1729_s24, %s2068_s24   ;;  %s1664_s23 = sphi %s1727_s23, %s2064_s23   ;;  %s1660_s22 = sphi %s1725_s22, %s2067_s22   ;;  %s1656_s21 = sphi %s1723_s21, %s2066_s21  }
   0xe   : > { %s71_s28 = sadd.s32 1, %s1664_s23  ;;  %p40_p0 = scmp.ge.s32.totalorder %s38_s27, 2 }
   0xf   : > { %p78_p1 = scmp.ne.s32.totalorder %s1664_s23, %s1660_s22  ;;  %p79_p2 = scmp.eq.s32.totalorder %s1676_s26, 0 }
  0x10   : > { %s2071_s27 = smov (%p40_p0, %s38_s27), 0  ;;  %p1363_p4 = scmp.lt.s32.totalorder %s1676_s26, 2 }
  0x11   : > { %2046 = sst [smem:[#allocation17_spill]] %s2071_s27  ;;  %p80_p3 = por %p79_p2, %p78_p1 }
  0x12   : > { %s68_s29 = ssub.s32 %s1672_s25, %s2071_s27  ;;  %s253_s30 = sand.u32 1, %s1676_s26  }
  0x13   : > { %p69_p5 = scmp.eq.s32.totalorder %s68_s29, 0  ;;  %s1765_s7 = sand.u32 1, %s1664_s23  }
  0x14   : > { %s2033_s8 = smul.u32 384, %s1672_s25  ;;  %s2048_s1 = sld [smem:[#allocation20_spill]] }
  0x15   : > { %s1769_s9 = scalar_select %p69_p5, %s1664_s23, %s71_s28  }
  0x16   : > { %s2032_s10 = smul.u32 24, %s1765_s7  ;;  %p1777_p6 = pnand %p1363_p4, %p80_p3 }
  0x17   : > { %2047 = sst [smem:[#allocation18_spill]] %s1769_s9  ;;  %s1785_s17 = scalar_lea.sflag [#allocation5], %s253_s30 }
  0x18   : > { %s257_s15 = scalar_lea.vmem [#allocation4], %s2032_s10  ;;  %p1789_p7 = pneg %p1777_p6 }
  0x19   : > { %s264_s16 = sshll.u32 %s257_s15, 4  ;;  %s1678_s20 = smov [#allocation4]   ;;  %s265_s16 = int_to_ptr.vmem [resolvable:$true] %s264_s16 }
  0x1a   : > { %s263_s13 = scalar_lea.hbm %s2048_s1, %s2033_s8  ;;  %s1461_s19 = scalar_lea.vmem %s265_s16, 384 }
  0x1b   : > { %p1462_p8 = scmp.ne.s32.totalorder %s265_s16, %s1461_s19  ;;  %s1466_s28 = sshll.u32 %s1678_s20, 4  ;;  %s1467_s28 = int_to_ptr.vmem [resolvable:$false] %s1466_s28 }
  0x1c   : > { %s1468_s29 = scalar_lea.vmem %s1467_s28, 768  ;;  %p1469_p11 = scmp.lt.s32.totalorder %s265_s16, %s1467_s28 }
  0x1d   : > { %p1464_p9 = pnand %p1462_p8, %p1789_p7  ;;  %p1470_p12 = scmp.lt.s32.totalorder %s1468_s29, %s1461_s19 }
  0x1f   : > { %p1465_p10 = pneg %p1464_p9  ;;  %p1471_p13 = por %p1470_p12, %p1469_p11 }
  0x21   : > { %p1472_p0 = pnand %p1471_p13, %p1465_p10 }
  0x23   : > { %1475 = shalt.err (!%p1472_p0)
}
  0x24   : > { %s2037_s11 = smov 64   ;;  %s2039_s12 = smov 4  }
  0x25   : > { %1349 = dma.hbm_to_vmem [thread:$0]  (!%p1777_p6), %s263_s13, 384, %s265_s16, %s1785_s17, %s2037_s11, %s2037_s11, %s2039_s12  }
  0x26   : > { %s1137_s15 = sshll.u32 %s1765_s7, 7  ;;  %s1206_s20 = sshll.u32 %s1672_s25, 11 }
  0x27   : > { %s305_s29 = scalar_lea.hbm %s2028_s3, %s1206_s20  ;;  %s299_s10 = scalar_lea.vmem [#allocation7], %s1137_s15 }
  0x28   : > { %s306_s8 = sshll.u32 %s299_s10, 4  ;;  %s1808_s1 = scalar_lea.sflag [#allocation8], %s253_s30  ;;  %s307_s8 = int_to_ptr.vmem [resolvable:$true] %s306_s8 }
  0x29   : > { %s1489_s27 = scalar_lea.vmem %s307_s8, 2048  ;;  %s1681_s9 = smov [#allocation7]  }
  0x2a   : > { %p1490_p1 = scmp.ne.s32.totalorder %s307_s8, %s1489_s27  ;;  %s1494_s23 = sshll.u32 %s1681_s9, 4  ;;  %s1495_s23 = int_to_ptr.vmem [resolvable:$false] %s1494_s23 }
  0x2b   : > { %s1496_s13 = scalar_lea.vmem %s1495_s23, 4096  ;;  %p1497_p4 = scmp.lt.s32.totalorder %s307_s8, %s1495_s23 }
  0x2c   : > { %p1492_p2 = pnand %p1490_p1, %p1789_p7  ;;  %p1498_p5 = scmp.lt.s32.totalorder %s1496_s13, %s1489_s27 }
  0x2e   : > { %p1493_p3 = pneg %p1492_p2  ;;  %p1499_p8 = por %p1498_p5, %p1497_p4 }
  0x30   : > { %p1500_p9 = pnand %p1499_p8, %p1493_p3 }
  0x32   : > { %1503 = shalt.err (!%p1500_p9)
}
  0x33   : > { %1355 = dma.hbm_to_vmem [thread:$0]  (!%p1777_p6), %s305_s29, 2048, %s307_s8, %s1808_s1, %s2037_s11, %s2037_s11, %s2039_s12  }
  0x34   : > { %s2036_s23 = sadd.s32 4294967295, %s1676_s26   ;;  %p84_p10 = scmp.ne.s32.totalorder %s1660_s22, %s1656_s21 }
  0x35   : > { %p1823_p11 = scmp.eq.s32.totalorder %s2036_s23, 0  ;;  %p1132_p12 = scmp.ge.s32.totalorder %s1676_s26, 1 }
  0x36   : > { %p227_p13 = scmp.lt.s32.totalorder %s1676_s26, 3  ;;  %s1682_s21 = smov [#allocation2]  }
  0x37   : > { %p1831_p0 = por %p1823_p11, %p84_p10  ;;  %s242_s8 = sshll.u32 %s1682_s21, 4  ;;  %s1839_s8 = int_to_ptr.vmem [resolvable:$true] %s242_s8 }
  0x38   : > { %p1835_p1 = pnand %p1132_p12, %p227_p13  ;;  %s2054_s10 = smul.u32 384, %s1672_s25 }
  0x39   : > { %s2052_s30 = scalar_select %p1831_p0, 1, 0 }
  0x3a   : > { %p1342_p2 = pneg %p1835_p1  ;;  %s2055_s2 = sld [smem:[#allocation21_spill]] }
  0x3b   : > { %s2056_s28 = smul.u32 24, %s1765_s7  ;;  %s1140_s13 = sshll.u32 %s1765_s7, 6 }
  0x3c   : > { %p1853_p3 = pnand %p1342_p2, %p1823_p11  ;;  %s1683_s11 = smov [#allocation6]  }
  0x3d   : > { %s278_s19 = scalar_lea.vmem [#allocation6], %s2056_s28  ;;  %s1522_s12 = sshll.u32 %s1683_s11, 4  ;;  %s1523_s12 = int_to_ptr.vmem [resolvable:$false] %s1522_s12 }
  0x3e   : > { %s285_s29 = sshll.u32 %s278_s19, 4  ;;  %s1524_s16 = scalar_lea.vmem %s1523_s12, 768  ;;  %s286_s29 = int_to_ptr.vmem [resolvable:$true] %s285_s29 }
  0x3f   : > { %s1517_s21 = scalar_lea.vmem %s286_s29, 384  ;;  %p1525_p9 = scmp.lt.s32.totalorder %s286_s29, %s1523_s12 }
  0x40   : > { %s284_s20 = scalar_lea.hbm %s2055_s2, %s2054_s10  ;;  %p1518_p4 = scmp.ne.s32.totalorder %s286_s29, %s1517_s21 }
  0x41   : > { %p1526_p10 = scmp.lt.s32.totalorder %s1524_s16, %s1517_s21 }
  0x42   : > { %p1520_p5 = pnand %p1518_p4, %p1789_p7 }
  0x43   : > { %p1527_p12 = por %p1526_p10, %p1525_p9 }
  0x44   : > { %p1521_p8 = pneg %p1520_p5 }
  0x46   : > { %p1528_p13 = pnand %p1527_p12, %p1521_p8 }
  0x48   : > { %1531 = shalt.err (!%p1528_p13)
}
  0x49   : > { %s2058_s10 = smov 4   ;;  %s2059_s15 = smov 64  }
  0x4a   : > { %1352 = dma.hbm_to_vmem [thread:$0]  (!%p1777_p6), %s284_s20, 384, %s286_s29, %s1785_s17, %s2059_s15, %s2059_s15, %s2058_s10  }
  0x4b   : > { %p1534_p2 = pneg %p1853_p3  ;;  %s1543_s11 = scalar_lea.vmem %s1839_s8, 128 }
  0x4c   : > { %p1544_p4 = scmp.ne.s32.totalorder %s1839_s8, %s1543_s11  ;;  %p1551_p8 = scmp.lt.s32.totalorder %s1839_s8, %s1839_s8 }
  0x4d   : > { %p1552_p9 = scmp.lt.s32.totalorder %s1543_s11, %s1543_s11 }
  0x4e   : > { %p1546_p5 = pnand %p1544_p4, %p1534_p2 }
  0x4f   : > { %p1553_p10 = por %p1552_p9, %p1551_p8 }
  0x50   : > { %p1547_p0 = pneg %p1546_p5 }
  0x52   : > { %p1554_p12 = pnand %p1553_p10, %p1547_p0 }
  0x54   : > { %1557 = shalt.err (!%p1554_p12)
}
  0x55   : > { %s2060_s0 = sld [smem:[#allocation19_spill]]  ;;  %s1207_s17 = sshll.u32 %s1672_s25, 10 }
  0x56   : > { %s320_s20 = scalar_lea.vmem [#allocation9], %s1140_s13  ;;  %s326_s16 = scalar_lea.hbm %s2029_s4, %s1207_s17 }
  0x57   : > { %s327_s19 = sshll.u32 %s320_s20, 4  ;;  %s1684_s23 = smov [#allocation9]   ;;  %s328_s19 = int_to_ptr.vmem [resolvable:$true] %s327_s19 }
  0x58   : > { %s1571_s11 = scalar_lea.vmem %s328_s19, 1024  ;;  %s1576_s2 = sshll.u32 %s1684_s23, 4  ;;  %s1577_s2 = int_to_ptr.vmem [resolvable:$false] %s1576_s2 }
  0x59   : > { %p1572_p0 = scmp.ne.s32.totalorder %s328_s19, %s1571_s11  ;;  %s1578_s12 = scalar_lea.vmem %s1577_s2, 2048 }
  0x5a   : > { %p1579_p4 = scmp.lt.s32.totalorder %s328_s19, %s1577_s2  ;;  %p1580_p5 = scmp.lt.s32.totalorder %s1578_s12, %s1571_s11 }
  0x5b   : > { %1345 = dma.hbm_to_vmem [thread:$0]  (!%p1853_p3), %s2060_s0, 128, %s1839_s8, [#allocation3]  }
  0x5c   : > { %p1574_p13 = pnand %p1572_p0, %p1789_p7  ;;  %p1581_p3 = por %p1580_p5, %p1579_p4 }
  0x5e   : > { %p1575_p2 = pneg %p1574_p13 }
  0x60   : > { %p1582_p8 = pnand %p1581_p3, %p1575_p2 }
  0x62   : > { %1585 = shalt.err (!%p1582_p8)
}
  0x63   : > { %1358 = dma.hbm_to_vmem [thread:$0]  (!%p1777_p6), %s326_s16, 1024, %s328_s19, %s1808_s1, %s2059_s15, %s2059_s15, %s2058_s10  }
  0x64   : > { %s1143_s8 = sshll.u32 %s1765_s7, 3  ;;  %s1144_s13 = sshll.u32 %s1672_s25, 7 }
  0x65   : > { %s346_s2 = scalar_lea.hbm %s2030_s5, %s1144_s13  ;;  %s341_s20 = scalar_lea.vmem [#allocation10], %s1143_s8 }
  0x66   : > { %s348_s29 = sshll.u32 %s341_s20, 4  ;;  %s338_s21 = scalar_lea.sflag [#allocation11], %s1765_s7  ;;  %s349_s29 = int_to_ptr.vmem [resolvable:$true] %s348_s29 }
  0x67   : > { %s1599_s11 = scalar_lea.vmem %s349_s29, 128  ;;  %s1685_s23 = smov [#allocation10]  }
  0x68   : > { %p1600_p9 = scmp.ne.s32.totalorder %s349_s29, %s1599_s11  ;;  %s1604_s12 = sshll.u32 %s1685_s23, 4  ;;  %s1605_s12 = int_to_ptr.vmem [resolvable:$false] %s1604_s12 }
  0x69   : > { %s1606_s0 = scalar_lea.vmem %s1605_s12, 256  ;;  %p1607_p0 = scmp.lt.s32.totalorder %s349_s29, %s1605_s12 }
  0x6a   : > { %p1602_p10 = pnand %p1600_p9, %p1789_p7  ;;  %p1608_p13 = scmp.lt.s32.totalorder %s1606_s0, %s1599_s11 }
  0x6c   : > { %p1603_p12 = pneg %p1602_p10  ;;  %p1609_p2 = por %p1608_p13, %p1607_p0 }
  0x6e   : > { %p1610_p4 = pnand %p1609_p2, %p1603_p12 }
  0x70   : > { %1613 = shalt.err (!%p1610_p4)
}
  0x71   : > { %1361 = dma.hbm_to_vmem [thread:$0]  (!%p1777_p6), %s346_s2, 128, %s349_s29, %s338_s21  }
  0x72   : > { %357 = sbr.rel (%p1835_p1) target bundleno = 962 (0x3c2), region = 44 }
  0x77   : > { %1639 = dma.done.wait (%p1823_p11), [#allocation3], 128  }
  0x78   : > { %1641 = vsyncadd (%p1823_p11), [#allocation3], 4294967168  ;;  %s2061_s1 = sadd.s32 4294967295, %s1676_s26   ;;  %s365_s7 = sand.u32 1, %s1660_s22  }
  0x79   : > { %s363_s0 = sand.u32 1, %s2061_s1   ;;  %s1327_s18 = smul.u32 24, %s365_s7 }
  0x7a   : > { %s364_s10 = scalar_lea.sflag [#allocation5], %s363_s0  ;;  %p2062_p7 = scmp.ne.s32.totalorder %s2052_s30, 0 }
  0x7b   : > { %s367_s15 = scalar_lea.vmem [#allocation4], %s1327_s18 }
  0x7c   : > { %1643 = dma.done.wait (%p2062_p7), %s364_s10, 768  }
  0x7d   : > { %1645 = vsyncadd (%p2062_p7), %s364_s10, 4294966528  ;;  %s1147_s14 = sshll.u32 %s365_s7, 7  ;;  %s1912_s9 = scalar_lea.vmem [#allocation6], %s1327_s18 }
  0x7e   : > { %s382_s27 = scalar_lea.sflag [#allocation8], %s363_s0  ;;  %s1914_s19 = scalar_lea.vmem [#allocation7], %s1147_s14 }
  0x7f   : > { %1647 = dma.done.wait (%p2062_p7), %s382_s27, 3072  }
  0x80   : > { %1649 = vsyncadd (%p2062_p7), %s382_s27, 4294964224  ;;  %s1148_s16 = sshll.u32 %s365_s7, 6  ;;  %s1149_s8 = sshll.u32 %s365_s7, 3 }
  0x81   : > { %s1920_s13 = scalar_lea.vmem [#allocation9], %s1148_s16  ;;  %s400_s28 = scalar_lea.sflag [#allocation11], %s365_s7 }
  0x82   : > { %s1922_s17 = scalar_lea.vmem [#allocation10], %s1149_s8 }
  0x83   : > { %1651 = dma.done.wait (%p2062_p7), %s400_s28, 128  }
  0x84   : > { %1653 = vsyncadd (%p2062_p7), %s400_s28, 4294967168  ;;  %v1686_v0 = vmov 0.0   ;;  %vm1687_vm0 = vmmov 0   ;;  %v1418_v1 = vld [vmem:[%s367_s15 + $0x10] sm:$0xff]   ;;  %v1419_v2 = vld [vmem:[%s367_s15 + $0x8] sm:$0xff]   ;;  %vm493_vm1 = vcmask 392192  }
  0x85   : > { %1243 = vmatprep.subr.bf16.mxu1 %v1686_v0  ;;  %1249 = vmatprep.mubr.msk.bf16.mxu1 %vm1687_vm0, %v1686_v0  ;;  %v1420_v3 = vld [vmem:[%s367_s15] sm:$0xff]   ;;  %v1425_v8 = vld [vmem:[%s1914_s19 + $0x30] sm:$0xff]   ;;  %v1426_v9 = vld [vmem:[%s1914_s19 + $0x28] sm:$0xff]   ;;  %p454_p6 = scmp.lt.s32.totalorder %s1668_s24, 1 }
  0x86   : > { %1263 = vmatprep.subr.bf16.mxu0 %v1686_v0  ;;  %1279 = vmatprep.mubr.msk.bf16.mxu0 %vm1687_vm0, %v1686_v0  ;;  %v462_v4 = vld [vmem:[#allocation2] sm:$0xff]  ;;  %v1423_v11 = vld [vmem:[%s1912_s9] sm:$0xff]   ;;  %v1427_v12 = vld [vmem:[%s1914_s19 + $0x20] sm:$0xff]  }
  0x87   : > { %1244 = vmatpush3.bf16.msra.mxu1 %v1418_v1  ;;  %v1424_v5 = vld [vmem:[%s1914_s19 + $0x38] sm:$0xff]   ;;  %v463_v6 = vpack.c.bf16 %v462_v4, %v462_v4  ;;  %v1429_v14 = vld [vmem:[%s1914_s19 + $0x10] sm:$0xff]   ;;  %v1430_v15 = vld [vmem:[%s1914_s19 + $0x8] sm:$0xff]   ;;  %s2073_s24 = smov (!%p454_p6, %s1668_s24), 1 }
  0x88   : > { %1245 = vmatprep.subr.bf16.mxu1 %v1686_v0  ;;  %v1421_v7 = vld [vmem:[%s1912_s9 + $0x10] sm:$0xff]   ;;  %1264 = vmatpush3.bf16.msra.mxu0 %v1424_v5  ;;  %v1422_v10 = vld [vmem:[%s1912_s9 + $0x8] sm:$0xff]   ;;  %v1434_v19 = vld [vmem:[%s1914_s19 + $0x68] sm:$0xff]   ;;  %s1150_s30 = sshll.u32 %s2073_s24, 3 }
  0x89   : > { %1265 = vmatprep.subr.bf16.mxu0 %v1686_v0  ;;  %v1428_v13 = vld [vmem:[%s1914_s19 + $0x18] sm:$0xff]   ;;  %v1431_v16 = vld [vmem:[%s1914_s19] sm:$0xff]   ;;  %v1433_v18 = vld [vmem:[%s1914_s19 + $0x70] sm:$0xff]   ;;  %s460_s29 = scalar_lea.vmem %s2031_s6, %s1150_s30 }
  0x8a   : > { %v1432_v17 = vld [vmem:[%s1914_s19 + $0x78] sm:$0xff]   ;;  %v1435_v20 = vld [vmem:[%s1914_s19 + $0x60] sm:$0xff]   ;;  %v1437_v38 = vld [vmem:[%s1914_s19 + $0x50] sm:$0xff]  }
  0x8b   : > { %1246 = vmatpush3.bf16.msra.mxu1 %v1419_v2  ;;  %v1436_v21 = vld [vmem:[%s1914_s19 + $0x58] sm:$0xff]   ;;  %v1151_v23 = vld [vmem:[%s1922_s17] ss:$0 sm:$0xff]  ;;  %v1156_v29 = vld [vmem:[%s1922_s17 + $0x1] ss:$0 sm:$0xff] }
  0x8c   : > { %1247 = vmatprep.subr.bf16.mxu1 %v1686_v0  ;;  %1266 = vmatpush3.bf16.msra.mxu0 %v1425_v8  ;;  %v1438_v39 = vld [vmem:[%s1914_s19 + $0x48] sm:$0xff]   ;;  %v1439_v40 = vld [vmem:[%s1914_s19 + $0x40] sm:$0xff]   ;;  %v1440_v41 = vld [vmem:[%s1920_s13 + $0x38] sm:$0xff]  }
  0x8d   : > { %1267 = vmatprep.subr.bf16.mxu0 %v1686_v0  ;;  %v1441_v42 = vld [vmem:[%s1920_s13 + $0x30] sm:$0xff]   ;;  %v1442_v43 = vld [vmem:[%s1920_s13 + $0x28] sm:$0xff]   ;;  %v1443_v44 = vld [vmem:[%s1920_s13 + $0x20] sm:$0xff]  }
  0x8e   : > { %v1444_v45 = vld [vmem:[%s1920_s13 + $0x18] sm:$0xff]   ;;  %v1161_v46 = vld [vmem:[%s1922_s17 + $0x2] ss:$0 sm:$0xff]  ;;  %v1445_v56 = vld [vmem:[%s1920_s13 + $0x10] sm:$0xff]  }
  0x8f   : > { %1248 = vmatpush3.bf16.msra.mxu1 %v1420_v3  ;;  %v1446_v57 = vld [vmem:[%s1920_s13 + $0x8] sm:$0xff]   ;;  %v1447_v58 = vld [vmem:[%s1920_s13] sm:$0xff]  }
  0x90   : > { %1253 = vmatprep.subr.bf16.mxu1 %v1686_v0  ;;  %1268 = vmatpush3.bf16.msra.mxu0 %v1426_v9  ;;  %v1186_v59 = vld [vmem:[%s1922_s17 + $0x3] ss:$0 sm:$0xff] }
  0x91   : > { %1269 = vmatprep.subr.bf16.mxu0 %v1686_v0 }
  0x92   : > { %1250 = vmatmul.mubr.msk.bf16.vlgmr.msra.gmra.mxu1 %vm493_vm1, %v463_v6 }
  0x93   : > { %1254 = vmatpush3.bf16.msra.mxu1 %v1421_v7  ;;  %1259 = vmatprep.mubr.msk.bf16.mxu1 %vm1687_vm0, %v1686_v0 }
  0x94   : > { %1255 = vmatprep.subr.bf16.mxu1 %v1686_v0  ;;  %1270 = vmatpush3.bf16.msra.mxu0 %v1427_v12 }
  0x95   : > { %1271 = vmatprep.subr.bf16.mxu0 %v1686_v0 }
  0x97   : > { %1256 = vmatpush3.bf16.msra.mxu1 %v1422_v10 }
  0x98   : > { %1257 = vmatprep.subr.bf16.mxu1 %v1686_v0  ;;  %1272 = vmatpush3.bf16.msra.mxu0 %v1428_v13 }
  0x99   : > { %1273 = vmatprep.subr.bf16.mxu0 %v1686_v0 }
  0x9b   : > { %1258 = vmatpush3.bf16.msra.mxu1 %v1423_v11 }
  0x9c   : > { %1283 = vmatprep.subr.bf16.mxu1 %v1686_v0  ;;  %1274 = vmatpush3.bf16.msra.mxu0 %v1429_v14 }
  0x9d   : > { %1275 = vmatprep.subr.bf16.mxu0 %v1686_v0 }
  0x9e   : > { %1260 = vmatmul.mubr.msk.bf16.vlgmr.msra.gmra.mxu1 %vm493_vm1, %v463_v6  ;;  %v1195_v6 = vld [vmem:[%s1922_s17 + $0x4] ss:$0 sm:$0xff] }
  0x9f   : > { %1299 = vmatprep.mubr.msk.bf16.mxu1 %vm1687_vm0, %v1686_v0  ;;  %1284 = vmatpush3.bf16.msra.mxu1 %v1432_v17 }
  0xa0   : > { %1276 = vmatpush3.bf16.msra.mxu0 %v1430_v15  ;;  %1285 = vmatprep.subr.bf16.mxu1 %v1686_v0 }
  0xa1   : > { %1277 = vmatprep.subr.bf16.mxu0 %v1686_v0 }
  0xa3   : > { %1286 = vmatpush3.bf16.msra.mxu1 %v1433_v18 }
  0xa4   : > { %1278 = vmatpush3.bf16.msra.mxu0 %v1431_v16  ;;  %1287 = vmatprep.subr.bf16.mxu1 %v1686_v0 }
  0xa5   : > { %1303 = vmatprep.subr.bf16.mxu0 %v1686_v0 }
  0xa7   : > { %1288 = vmatpush3.bf16.msra.mxu1 %v1434_v19 }
  0xa8   : > { %1289 = vmatprep.subr.bf16.mxu1 %v1686_v0 }
  0xab   : > { %1290 = vmatpush3.bf16.msra.mxu1 %v1435_v20 }
  0xac   : > { %1291 = vmatprep.subr.bf16.mxu1 %v1686_v0 }
  0xaf   : > { %1292 = vmatpush3.bf16.msra.mxu1 %v1436_v21 }
  0xb0   : > { %1293 = vmatprep.subr.bf16.mxu1 %v1686_v0 }
  0xb3   : > { %1294 = vmatpush3.bf16.msra.mxu1 %v1437_v38 }
  0xb4   : > { %1295 = vmatprep.subr.bf16.mxu1 %v1686_v0 }
  0xb7   : > { %1296 = vmatpush3.bf16.msra.mxu1 %v1438_v39 }
  0xb8   : > { %1297 = vmatprep.subr.bf16.mxu1 %v1686_v0 }
  0xbb   : > { %1298 = vmatpush3.bf16.msra.mxu1 %v1439_v40 }
 0x152   : > { %v531_v22 = vpop.f32.mrf.mxu1 }
 0x153   : > { %v532_v26 = vadd.f32 %v1151_v23, %v531_v22 }
 0x154   : > { %v1251_v24 = vpop.f32.mrf.mxu1 }
 0x155   : > { %v537_v28 = vmul.f32 0.01, %v532_v26 }
 0x156   : > { %v534_v25 = vpop.f32.mrf.mxu1 }
 0x157   : > { %v538_v31 = vmax.f32 %v532_v26, %v537_v28 }
 0x158   : > { %v1252_v27 = vpop.f32.mrf.mxu1 }
 0x15e   : > { %v602_v30 = vpop.f32.mrf.mxu1 }
 0x15f   : > { %v603_v32 = vadd.f32 %v1156_v29, %v602_v30 }
 0x160   : > { %v1261_v33 = vpop.f32.mrf.mxu1 }
 0x161   : > { %v608_v34 = vadd.f32 %v603_v32, %v538_v31 }
 0x162   : > { %v605_v35 = vpop.f32.mrf.mxu1 }
 0x163   : > { %v609_v36 = vpack.c.bf16 %v608_v34, %v608_v34 }
 0x164   : > { %v1262_v37 = vpop.f32.mrf.mxu1 }
 0x165   : > { %1280 = vmatmul.mubr.bf16.vlgmr.msra.gmra.mxu0 %v609_v36 }
 0x166   : > { %1319 = vmatprep.mubr.msk.bf16.mxu0 %vm1687_vm0, %v1686_v0  ;;  %1304 = vmatpush3.bf16.msra.mxu0 %v1440_v41 }
 0x167   : > { %1305 = vmatprep.subr.bf16.mxu0 %v1686_v0 }
 0x16a   : > { %1306 = vmatpush3.bf16.msra.mxu0 %v1441_v42 }
 0x16b   : > { %1307 = vmatprep.subr.bf16.mxu0 %v1686_v0 }
 0x16e   : > { %1308 = vmatpush3.bf16.msra.mxu0 %v1442_v43 }
 0x16f   : > { %1309 = vmatprep.subr.bf16.mxu0 %v1686_v0 }
 0x172   : > { %1310 = vmatpush3.bf16.msra.mxu0 %v1443_v44 }
 0x173   : > { %1311 = vmatprep.subr.bf16.mxu0 %v1686_v0 }
 0x176   : > { %1312 = vmatpush3.bf16.msra.mxu0 %v1444_v45 }
 0x177   : > { %1313 = vmatprep.subr.bf16.mxu0 %v1686_v0 }
 0x17a   : > { %1314 = vmatpush3.bf16.msra.mxu0 %v1445_v56 }
 0x17b   : > { %1315 = vmatprep.subr.bf16.mxu0 %v1686_v0 }
 0x17e   : > { %1316 = vmatpush3.bf16.msra.mxu0 %v1446_v57 }
 0x17f   : > { %1317 = vmatprep.subr.bf16.mxu0 %v1686_v0 }
 0x182   : > { %1318 = vmatpush3.bf16.msra.mxu0 %v1447_v58 }
 0x225   : > { %v713_v47 = vpop.f32.mrf.mxu0 }
 0x226   : > { %v714_v48 = vadd.f32 %v1161_v46, %v713_v47 }
 0x227   : > { %v1281_v49 = vpop.f32.mrf.mxu0 }
 0x228   : > { %v719_v50 = vmul.f32 0.01, %v714_v48 }
 0x229   : > { %v716_v51 = vpop.f32.mrf.mxu0 }
 0x22a   : > { %v720_v52 = vmax.f32 %v714_v48, %v719_v50 }
 0x22b   : > { %v1282_v53 = vpop.f32.mrf.mxu0 }
 0x22c   : > { %v721_v54 = vadd.f32 %v720_v52, %v608_v34 }
 0x22e   : > { %v722_v55 = vpack.c.bf16 %v721_v54, %v721_v54 }
 0x230   : > { %1300 = vmatmul.mubr.bf16.vlgmr.msra.gmra.mxu1 %v722_v55 }
 0x2f0   : > { %v827_v60 = vpop.f32.mrf.mxu1 }
 0x2f1   : > { %v828_v61 = vadd.f32 %v1186_v59, %v827_v60 }
 0x2f2   : > { %v1301_v62 = vpop.f32.mrf.mxu1 }
 0x2f3   : > { %v833_v63 = vmul.f32 0.01, %v828_v61 }
 0x2f4   : > { %v830_v1 = vpop.f32.mrf.mxu1 }
 0x2f5   : > { %v834_v2 = vmax.f32 %v828_v61, %v833_v63 }
 0x2f6   : > { %v1302_v3 = vpop.f32.mrf.mxu1 }
 0x2f7   : > { %v835_v4 = vadd.f32 %v834_v2, %v721_v54 }
 0x2f9   : > { %v836_v5 = vpack.c.bf16 %v835_v4, %v835_v4 }
 0x2fb   : > { %1320 = vmatmul.mubr.bf16.vlgmr.msra.gmra.mxu0 %v836_v5 }
 0x3bb   : > { %v940_v0 = vpop.f32.mrf.mxu0 }
 0x3bc   : > { %v941_v7 = vadd.f32 %v1195_v6, %v940_v0 }
 0x3bd   : > { %v1321_v8 = vpop.f32.mrf.mxu0 }
 0x3be   : > { %946 = vst [vmem:[%s460_s29] sm:$0xff] %v941_v7 }
 0x3bf   : > { %v943_v9 = vpop.f32.mrf.mxu0 }
 0x3c1   : > { %v1322_v10 = vpop.f32.mrf.mxu0 }
 0x3c2 PF: > { %s26_s26 = sadd.s32 1, %s1676_s26   ;;  %s2063_s11 = sld [smem:[#allocation16_spill]] }
 0x3c3   : > { %p23_p11 = scmp.ge.s32.totalorder %s26_s26, 4   ;;  %s2064_s23 = sld [smem:[#allocation18_spill]] }
 0x3c4   : > { %s2065_s12 = sld [smem:[#allocation17_spill]]  ;;  %s2066_s21 = smov %s1660_s22 }
 0x3c5   : > { %s2068_s24 = smov %s1672_s25 }
 0x3c6   :  { %25 = sbr.rel (!%p23_p11) target bundleno = 13 (0xd), region = 139 }
 0x3c8   : > { %s2067_s22 = smov %s2063_s11 }
 0x3ca   : > { %s2069_s25 = smov %s2065_s12 }
 0x3cb   :  { %972 = vsyncpa [#allocation3], 1 }
 0x3cc   :  { %974 = vsyncpa [#allocation3 + $0x1], 1 }
 0x3cd   :  { %975 = vsyncpa [#allocation5], 1 }
 0x3ce   :  { %977 = vsyncpa [#allocation5 + $0x1], 1 }
 0x3cf   :  { %978 = vsyncpa [#allocation8], 1 }
 0x3d0   :  { %980 = vsyncpa [#allocation8 + $0x1], 1 }
 0x3d1   :  { %981 = vsyncpa [#allocation11], 1 }
 0x3d2   :  { %983 = vsyncpa [#allocation11 + $0x1], 1 }

</bundles_post_ra>
